<compile_context>
chip_gen: v7x
topology: tpu7x:2x2x1
jax: 0.10.0
libtpu: 0.0.40
codegen_flags: <defaults>
</compile_context>

<pallas_src>
import jax
import jax.numpy as jnp
from jax.experimental import pallas as pl
from jax.experimental.pallas import tpu as pltpu

N_MFCC = 32
LSTM_HIDDEN_SIZE = 32
LSTM_NUM_LAYERS = 1
BI_LSTM = False
FRAME_AGGREGATION_MEAN = True


def _lstm_mean_kernel(x_ref, wih_ref, whh_ref, b_ref, out_ref, gx_ref):
    """Single-invocation LSTM forward + mean over time.

    x_ref   : (B*T, I)   batch-major inputs (row = b*T + t), free reshape of x
    wih_ref : (I, 4H)    input->gates weight, transposed; i/f/o cols pre-scaled by 0.5
    whh_ref : (H, 4H)    hidden->gates weight, transposed; i/f/o cols pre-scaled by 0.5
    b_ref   : (1, 4H)    (b_ih + b_hh); i/f/o entries pre-scaled by 0.5
    out_ref : (B, H)     mean over time of hidden states
    gx_ref  : (B*T, 4H)  VMEM scratch holding the hoisted input projection
    """
    B, H = out_ref.shape
    T = x_ref.shape[0] // B
    H4 = 4 * H

    # ---- Prologue: hoist the input projection out of the recurrence.
    # One dense (B*T, I) @ (I, 4H) MXU matmul + one bias add for all steps.
    gx_ref[...] = (
        jnp.dot(x_ref[...], wih_ref[...], preferred_element_type=jnp.float32)
        + b_ref[...])

    whh = whh_ref[...]                                   # (H, 4H), stays in vregs

    # Lane constants (hoisted): lanes [2H, 3H) hold the 'g' gate (tanh); the
    # rest are i/f/o (sigmoid).  With the 0.5 pre-scale on i/f/o columns,
    # act = scale * tanh(gates) + shift reproduces sigmoid there exactly.
    lane = jax.lax.broadcasted_iota(jnp.int32, (B, H4), 1)
    is_g = jnp.logical_and(lane >= 2 * H, lane < 3 * H)
    act_scale = jnp.where(is_g, 1.0, 0.5).astype(jnp.float32)
    act_shift = jnp.where(is_g, 0.0, 0.5).astype(jnp.float32)

    inv_t = jnp.float32(1.0 / T)

    def step(t, h, c, acc):
        # Batch-major gx: rows for time t are {b*T + t} -> sublane-strided load.
        gates = gx_ref[pl.ds(t, B, stride=T), :] + jnp.dot(
            h, whh, preferred_element_type=jnp.float32)   # (B, 4H)

        tact = jnp.tanh(gates)                 # single EUP pass per step
        act = act_scale * tact + act_shift     # VALU fixup: sigmoid on i/f/o lanes

        i_g = act[:, 0 * H:1 * H]
        f_g = act[:, 1 * H:2 * H]
        g_g = act[:, 2 * H:3 * H]
        o_g = act[:, 3 * H:4 * H]

        c_new = f_g * c + i_g * g_g
        h_new = o_g * jnp.tanh(c_new)
        return h_new, c_new, acc + h_new

    h = jnp.zeros((B, H), jnp.float32)
    c = jnp.zeros((B, H), jnp.float32)
    acc = jnp.zeros((B, H), jnp.float32)

    if T <= 32:
        # Short fixed trip count: static Python unroll -> static strided slices,
        # full LLO scheduler visibility.
        for t in range(T):
            h, c, acc = step(t, h, c, acc)
    else:
        # TODO(synk): sweep this unroll factor against vreg pressure for long T.
        _, _, acc = jax.lax.fori_loop(
            0, T, lambda t, carry: step(t, *carry), (h, c, acc), unroll=8)

    out_ref[...] = (acc * inv_t).astype(out_ref.dtype)


def prepare_lstm_params(w_ih, w_hh, b_ih, b_hh):
    """One-time ("model load") param prep, kept OUT of the per-call jitted path.

    w_ih: (4H, I), w_hh: (4H, H), b_ih/b_hh: (4H,)  -- PyTorch nn.LSTM layout.
    Returns (wih_s (I,4H), whh_s (H,4H), bias_s (1,4H)) with the i/f/o columns
    pre-scaled by 0.5 for the single-tanh activation formulation.
    """
    H4 = w_ih.shape[0]
    H = H4 // 4
    lane = jnp.arange(H4)
    is_g = jnp.logical_and(lane >= 2 * H, lane < 3 * H)
    col_scale = jnp.where(is_g, 1.0, 0.5).astype(jnp.float32)

    wih_s = (jnp.transpose(w_ih).astype(jnp.float32) * col_scale[None, :])
    whh_s = (jnp.transpose(w_hh).astype(jnp.float32) * col_scale[None, :])
    bias_s = ((b_ih + b_hh).astype(jnp.float32) * col_scale).reshape(1, H4)
    return wih_s, whh_s, bias_s


@jax.jit
def lstm_speaker_encoder_forward(x, wih_s, whh_s, bias_s):
    """x: (B, T, N_MFCC) batch-first, like the PyTorch module.

    wih_s/whh_s/bias_s: output of prepare_lstm_params (precomputed once).
    Returns (B, H): mean over time of the LSTM hidden states.
    """
    B, T, I = x.shape
    H4 = whh_s.shape[1]
    H = H4 // 4

    # Free reshape (no transpose, no extra HBM pass): batch-major rows b*T + t.
    x2d = x.reshape(B * T, I).astype(jnp.float32)

    grid_spec = pltpu.PrefetchScalarGridSpec(
        num_scalar_prefetch=0,
        grid=(1,),                                       # single invocation
        in_specs=[
            pl.BlockSpec((B * T, I), lambda i: (0, 0)),
            pl.BlockSpec((I, H4), lambda i: (0, 0)),
            pl.BlockSpec((H, H4), lambda i: (0, 0)),
            pl.BlockSpec((1, H4), lambda i: (0, 0)),
        ],
        out_specs=pl.BlockSpec((B, H), lambda i: (0, 0)),
        scratch_shapes=[pltpu.VMEM((B * T, H4), jnp.float32)],
    )

    return pl.pallas_call(
        _lstm_mean_kernel,
        out_shape=jax.ShapeDtypeStruct((B, H), jnp.float32),
        grid_spec=grid_spec,
        compiler_params=pltpu.CompilerParams(
            dimension_semantics=("arbitrary",)),
    )(x2d, wih_s, whh_s, bias_s)


def _reference_forward(x, w_ih, w_hh, b_ih, b_hh):
    """Pure-JAX reference matching torch.nn.LSTM (1 layer, unidirectional)."""
    B, T, I = x.shape
    H = w_hh.shape[1]
    h0 = jnp.zeros((B, H), jnp.float32)
    c0 = jnp.zeros((B, H), jnp.float32)
    bias = b_ih + b_hh

    def step(carry, x_t):
        h, c = carry
        gates = x_t @ w_ih.T + h @ w_hh.T + bias
        i = jax.nn.sigmoid(gates[:, 0 * H:1 * H])
        f = jax.nn.sigmoid(gates[:, 1 * H:2 * H])
        g = jnp.tanh(gates[:, 2 * H:3 * H])
        o = jax.nn.sigmoid(gates[:, 3 * H:4 * H])
        c_new = f * c + i * g
        h_new = o * jnp.tanh(c_new)
        return (h_new, c_new), h_new

    xs = jnp.transpose(x, (1, 0, 2))                     # (T, B, I)
    (_, _), ys = jax.lax.scan(step, (h0, c0), xs)        # ys: (T, B, H)
    if FRAME_AGGREGATION_MEAN:
        return jnp.mean(ys, axis=0)
    return ys[-1]


if __name__ == "__main__":
    B, T = 8, 8
    I, H = N_MFCC, LSTM_HIDDEN_SIZE

    key = jax.random.PRNGKey(0)
    k_x, k1, k2, k3, k4 = jax.random.split(key, 5)

    # Deterministic param init, PyTorch-style U(-1/sqrt(H), 1/sqrt(H)).
    bound = 1.0 / jnp.sqrt(jnp.float32(H))
    w_ih = jax.random.uniform(k1, (4 * H, I), jnp.float32, -bound, bound)
    w_hh = jax.random.uniform(k2, (4 * H, H), jnp.float32, -bound, bound)
    b_ih = jax.random.uniform(k3, (4 * H,), jnp.float32, -bound, bound)
    b_hh = jax.random.uniform(k4, (4 * H,), jnp.float32, -bound, bound)

    x = jax.random.normal(k_x, (B, T, I), jnp.float32)   # (B, T, N_MFCC)

    # Param prep happens ONCE, outside the per-call jitted forward.
    wih_s, whh_s, bias_s = prepare_lstm_params(w_ih, w_hh, b_ih, b_hh)
    wih_s, whh_s, bias_s = jax.block_until_ready((wih_s, whh_s, bias_s))

    out = lstm_speaker_encoder_forward(x, wih_s, whh_s, bias_s)
    out = jax.block_until_ready(out)

    ref = _reference_forward(x, w_ih, w_hh, b_ih, b_hh)
    assert out.shape == (B, H)
    assert jnp.allclose(out, ref, atol=2e-5, rtol=2e-5), "mismatch vs reference"

    print("KERNEL_OK")
</pallas_src>

<mosaic_0001>
module attributes {stable_mosaic.version = 11 : i64} {
  func.func @_lstm_mean_kernel(%arg0: i32, %arg1: memref<64x32xf32, #tpu.memory_space<vmem>>, %arg2: memref<32x128xf32, #tpu.memory_space<vmem>>, %arg3: memref<32x128xf32, #tpu.memory_space<vmem>>, %arg4: memref<1x128xf32, #tpu.memory_space<vmem>>, %arg5: memref<8x32xf32, #tpu.memory_space<vmem>>, %arg6: memref<64x128xf32, #tpu.memory_space<vmem>>) attributes {dimension_semantics = [#tpu.dimension_semantics<arbitrary>], iteration_bounds = array<i64: 1>, scalar_prefetch = 0 : i64, scratch_operands = 1 : i64, tpu.core_type = #tpu.core_type<tc>, window_params = [{pipeline_mode = #tpu.pipeline_mode<synchronous>, transform_indices = @transform_0, window_bounds = array<i64: 64, 32>}, {pipeline_mode = #tpu.pipeline_mode<synchronous>, transform_indices = @transform_1, window_bounds = array<i64: 32, 128>}, {pipeline_mode = #tpu.pipeline_mode<synchronous>, transform_indices = @transform_2, window_bounds = array<i64: 32, 128>}, {pipeline_mode = #tpu.pipeline_mode<synchronous>, transform_indices = @transform_3, window_bounds = array<i64: 1, 128>}, {pipeline_mode = #tpu.pipeline_mode<synchronous>, transform_indices = @transform_4, window_bounds = array<i64: 8, 32>}]} {
    %c0 = arith.constant 0 : index
    %c0_0 = arith.constant 0 : index
    %0 = vector.load %arg1[%c0, %c0_0] : memref<64x32xf32, #tpu.memory_space<vmem>>, vector<64x32xf32>
    %c0_1 = arith.constant 0 : index
    %c0_2 = arith.constant 0 : index
    %1 = vector.load %arg2[%c0_1, %c0_2] : memref<32x128xf32, #tpu.memory_space<vmem>>, vector<32x128xf32>
    %cst = arith.constant dense<0.000000e+00> : vector<64x128xf32>
    %2 = tpu.matmul %0, %1, %cst {dimension_numbers = #tpu.dot_dimension_numbers<[1], [0], [0], [1], [0, 0, 1, 1], [], []>} : vector<64x32xf32>, vector<32x128xf32>, vector<64x128xf32> -> vector<64x128xf32>
    %c0_3 = arith.constant 0 : index
    %c0_4 = arith.constant 0 : index
    %3 = vector.load %arg4[%c0_3, %c0_4] : memref<1x128xf32, #tpu.memory_space<vmem>>, vector<1x128xf32>
    %4 = vector.broadcast %3 : vector<1x128xf32> to vector<64x128xf32>
    %5 = arith.addf %2, %4 : vector<64x128xf32>
    %c0_5 = arith.constant 0 : index
    %c0_6 = arith.constant 0 : index
    %6 = vector.load %arg6[%c0_5, %c0_6] : memref<64x128xf32, #tpu.memory_space<vmem>>, vector<64x128xf32>
    tpu.vector_store %arg6[%c0_5, %c0_6], %5 {strides = array<i32>} : memref<64x128xf32, #tpu.memory_space<vmem>>, vector<64x128xf32>,
    %c0_7 = arith.constant 0 : index
    %c0_8 = arith.constant 0 : index
    %7 = vector.load %arg3[%c0_7, %c0_8] : memref<32x128xf32, #tpu.memory_space<vmem>>, vector<32x128xf32>
    %8 = tpu.iota {dimensions = array<i32: 1>} : vector<8x128xi32>
    %c64_i32 = arith.constant 64 : i32
    %9 = vector.broadcast %c64_i32 : i32 to vector<8x128xi32>
    %10 = arith.cmpi sge, %8, %9 : vector<8x128xi32>
    %c96_i32 = arith.constant 96 : i32
    %11 = vector.broadcast %c96_i32 : i32 to vector<8x128xi32>
    %12 = arith.cmpi slt, %8, %11 : vector<8x128xi32>
    %13 = arith.andi %10, %12 : vector<8x128xi1>
    %cst_9 = arith.constant 1.000000e+00 : f32
    %cst_10 = arith.constant 5.000000e-01 : f32
    %14 = vector.broadcast %cst_9 : f32 to vector<8x128xf32>
    %15 = vector.broadcast %cst_10 : f32 to vector<8x128xf32>
    %16 = arith.select %13, %14, %15 : vector<8x128xi1>, vector<8x128xf32>
    %cst_11 = arith.constant 0.000000e+00 : f32
    %cst_12 = arith.constant 5.000000e-01 : f32
    %17 = vector.broadcast %cst_11 : f32 to vector<8x128xf32>
    %18 = vector.broadcast %cst_12 : f32 to vector<8x128xf32>
    %19 = arith.select %13, %17, %18 : vector<8x128xi1>, vector<8x128xf32>
    %cst_13 = arith.constant 0.000000e+00 : f32
    %20 = vector.broadcast %cst_13 : f32 to vector<8x32xf32>
    %cst_14 = arith.constant 0.000000e+00 : f32
    %21 = vector.broadcast %cst_14 : f32 to vector<8x32xf32>
    %cst_15 = arith.constant 0.000000e+00 : f32
    %22 = vector.broadcast %cst_15 : f32 to vector<8x32xf32>
    %c0_16 = arith.constant 0 : index
    %c0_17 = arith.constant 0 : index
    %23 = tpu.strided_load %arg6[%c0_16, %c0_17] {strides = array<i32: 8, 1>} : memref<64x128xf32, #tpu.memory_space<vmem>>, vector<8x128xf32>
    %cst_18 = arith.constant dense<0.000000e+00> : vector<8x128xf32>
    %24 = tpu.matmul %20, %7, %cst_18 {dimension_numbers = #tpu.dot_dimension_numbers<[1], [0], [0], [1], [0, 0, 1, 1], [], []>} : vector<8x32xf32>, vector<32x128xf32>, vector<8x128xf32> -> vector<8x128xf32>
    %25 = arith.addf %23, %24 : vector<8x128xf32>
    %26 = math.tanh %25 : vector<8x128xf32>
    %27 = arith.mulf %16, %26 : vector<8x128xf32>
    %28 = arith.addf %27, %19 : vector<8x128xf32>
    %29 = vector.extract_strided_slice %28 {offsets = [0, 0], sizes = [8, 32], strides = [1, 1]} : vector<8x128xf32> to vector<8x32xf32>
    %30 = vector.extract_strided_slice %28 {offsets = [0, 32], sizes = [8, 32], strides = [1, 1]} : vector<8x128xf32> to vector<8x32xf32>
    %31 = vector.extract_strided_slice %28 {offsets = [0, 64], sizes = [8, 32], strides = [1, 1]} : vector<8x128xf32> to vector<8x32xf32>
    %32 = vector.extract_strided_slice %28 {offsets = [0, 96], sizes = [8, 32], strides = [1, 1]} : vector<8x128xf32> to vector<8x32xf32>
    %33 = arith.mulf %30, %21 : vector<8x32xf32>
    %34 = arith.mulf %29, %31 : vector<8x32xf32>
    %35 = arith.addf %33, %34 : vector<8x32xf32>
    %36 = math.tanh %35 : vector<8x32xf32>
    %37 = arith.mulf %32, %36 : vector<8x32xf32>
    %38 = arith.addf %22, %37 : vector<8x32xf32>
    %c1 = arith.constant 1 : index
    %c0_19 = arith.constant 0 : index
    %39 = tpu.strided_load %arg6[%c1, %c0_19] {strides = array<i32: 8, 1>} : memref<64x128xf32, #tpu.memory_space<vmem>>, vector<8x128xf32>
    %cst_20 = arith.constant dense<0.000000e+00> : vector<8x128xf32>
    %40 = tpu.matmul %37, %7, %cst_20 {dimension_numbers = #tpu.dot_dimension_numbers<[1], [0], [0], [1], [0, 0, 1, 1], [], []>} : vector<8x32xf32>, vector<32x128xf32>, vector<8x128xf32> -> vector<8x128xf32>
    %41 = arith.addf %39, %40 : vector<8x128xf32>
    %42 = math.tanh %41 : vector<8x128xf32>
    %43 = arith.mulf %16, %42 : vector<8x128xf32>
    %44 = arith.addf %43, %19 : vector<8x128xf32>
    %45 = vector.extract_strided_slice %44 {offsets = [0, 0], sizes = [8, 32], strides = [1, 1]} : vector<8x128xf32> to vector<8x32xf32>
    %46 = vector.extract_strided_slice %44 {offsets = [0, 32], sizes = [8, 32], strides = [1, 1]} : vector<8x128xf32> to vector<8x32xf32>
    %47 = vector.extract_strided_slice %44 {offsets = [0, 64], sizes = [8, 32], strides = [1, 1]} : vector<8x128xf32> to vector<8x32xf32>
    %48 = vector.extract_strided_slice %44 {offsets = [0, 96], sizes = [8, 32], strides = [1, 1]} : vector<8x128xf32> to vector<8x32xf32>
    %49 = arith.mulf %46, %35 : vector<8x32xf32>
    %50 = arith.mulf %45, %47 : vector<8x32xf32>
    %51 = arith.addf %49, %50 : vector<8x32xf32>
    %52 = math.tanh %51 : vector<8x32xf32>
    %53 = arith.mulf %48, %52 : vector<8x32xf32>
    %54 = arith.addf %38, %53 : vector<8x32xf32>
    %c2 = arith.constant 2 : index
    %c0_21 = arith.constant 0 : index
    %55 = tpu.strided_load %arg6[%c2, %c0_21] {strides = array<i32: 8, 1>} : memref<64x128xf32, #tpu.memory_space<vmem>>, vector<8x128xf32>
    %cst_22 = arith.constant dense<0.000000e+00> : vector<8x128xf32>
    %56 = tpu.matmul %53, %7, %cst_22 {dimension_numbers = #tpu.dot_dimension_numbers<[1], [0], [0], [1], [0, 0, 1, 1], [], []>} : vector<8x32xf32>, vector<32x128xf32>, vector<8x128xf32> -> vector<8x128xf32>
    %57 = arith.addf %55, %56 : vector<8x128xf32>
    %58 = math.tanh %57 : vector<8x128xf32>
    %59 = arith.mulf %16, %58 : vector<8x128xf32>
    %60 = arith.addf %59, %19 : vector<8x128xf32>
    %61 = vector.extract_strided_slice %60 {offsets = [0, 0], sizes = [8, 32], strides = [1, 1]} : vector<8x128xf32> to vector<8x32xf32>
    %62 = vector.extract_strided_slice %60 {offsets = [0, 32], sizes = [8, 32], strides = [1, 1]} : vector<8x128xf32> to vector<8x32xf32>
    %63 = vector.extract_strided_slice %60 {offsets = [0, 64], sizes = [8, 32], strides = [1, 1]} : vector<8x128xf32> to vector<8x32xf32>
    %64 = vector.extract_strided_slice %60 {offsets = [0, 96], sizes = [8, 32], strides = [1, 1]} : vector<8x128xf32> to vector<8x32xf32>
    %65 = arith.mulf %62, %51 : vector<8x32xf32>
    %66 = arith.mulf %61, %63 : vector<8x32xf32>
    %67 = arith.addf %65, %66 : vector<8x32xf32>
    %68 = math.tanh %67 : vector<8x32xf32>
    %69 = arith.mulf %64, %68 : vector<8x32xf32>
    %70 = arith.addf %54, %69 : vector<8x32xf32>
    %c3 = arith.constant 3 : index
    %c0_23 = arith.constant 0 : index
    %71 = tpu.strided_load %arg6[%c3, %c0_23] {strides = array<i32: 8, 1>} : memref<64x128xf32, #tpu.memory_space<vmem>>, vector<8x128xf32>
    %cst_24 = arith.constant dense<0.000000e+00> : vector<8x128xf32>
    %72 = tpu.matmul %69, %7, %cst_24 {dimension_numbers = #tpu.dot_dimension_numbers<[1], [0], [0], [1], [0, 0, 1, 1], [], []>} : vector<8x32xf32>, vector<32x128xf32>, vector<8x128xf32> -> vector<8x128xf32>
    %73 = arith.addf %71, %72 : vector<8x128xf32>
    %74 = math.tanh %73 : vector<8x128xf32>
    %75 = arith.mulf %16, %74 : vector<8x128xf32>
    %76 = arith.addf %75, %19 : vector<8x128xf32>
    %77 = vector.extract_strided_slice %76 {offsets = [0, 0], sizes = [8, 32], strides = [1, 1]} : vector<8x128xf32> to vector<8x32xf32>
    %78 = vector.extract_strided_slice %76 {offsets = [0, 32], sizes = [8, 32], strides = [1, 1]} : vector<8x128xf32> to vector<8x32xf32>
    %79 = vector.extract_strided_slice %76 {offsets = [0, 64], sizes = [8, 32], strides = [1, 1]} : vector<8x128xf32> to vector<8x32xf32>
    %80 = vector.extract_strided_slice %76 {offsets = [0, 96], sizes = [8, 32], strides = [1, 1]} : vector<8x128xf32> to vector<8x32xf32>
    %81 = arith.mulf %78, %67 : vector<8x32xf32>
    %82 = arith.mulf %77, %79 : vector<8x32xf32>
    %83 = arith.addf %81, %82 : vector<8x32xf32>
    %84 = math.tanh %83 : vector<8x32xf32>
    %85 = arith.mulf %80, %84 : vector<8x32xf32>
    %86 = arith.addf %70, %85 : vector<8x32xf32>
    %c4 = arith.constant 4 : index
    %c0_25 = arith.constant 0 : index
    %87 = tpu.strided_load %arg6[%c4, %c0_25] {strides = array<i32: 8, 1>} : memref<64x128xf32, #tpu.memory_space<vmem>>, vector<8x128xf32>
    %cst_26 = arith.constant dense<0.000000e+00> : vector<8x128xf32>
    %88 = tpu.matmul %85, %7, %cst_26 {dimension_numbers = #tpu.dot_dimension_numbers<[1], [0], [0], [1], [0, 0, 1, 1], [], []>} : vector<8x32xf32>, vector<32x128xf32>, vector<8x128xf32> -> vector<8x128xf32>
    %89 = arith.addf %87, %88 : vector<8x128xf32>
    %90 = math.tanh %89 : vector<8x128xf32>
    %91 = arith.mulf %16, %90 : vector<8x128xf32>
    %92 = arith.addf %91, %19 : vector<8x128xf32>
    %93 = vector.extract_strided_slice %92 {offsets = [0, 0], sizes = [8, 32], strides = [1, 1]} : vector<8x128xf32> to vector<8x32xf32>
    %94 = vector.extract_strided_slice %92 {offsets = [0, 32], sizes = [8, 32], strides = [1, 1]} : vector<8x128xf32> to vector<8x32xf32>
    %95 = vector.extract_strided_slice %92 {offsets = [0, 64], sizes = [8, 32], strides = [1, 1]} : vector<8x128xf32> to vector<8x32xf32>
    %96 = vector.extract_strided_slice %92 {offsets = [0, 96], sizes = [8, 32], strides = [1, 1]} : vector<8x128xf32> to vector<8x32xf32>
    %97 = arith.mulf %94, %83 : vector<8x32xf32>
    %98 = arith.mulf %93, %95 : vector<8x32xf32>
    %99 = arith.addf %97, %98 : vector<8x32xf32>
    %100 = math.tanh %99 : vector<8x32xf32>
    %101 = arith.mulf %96, %100 : vector<8x32xf32>
    %102 = arith.addf %86, %101 : vector<8x32xf32>
    %c5 = arith.constant 5 : index
    %c0_27 = arith.constant 0 : index
    %103 = tpu.strided_load %arg6[%c5, %c0_27] {strides = array<i32: 8, 1>} : memref<64x128xf32, #tpu.memory_space<vmem>>, vector<8x128xf32>
    %cst_28 = arith.constant dense<0.000000e+00> : vector<8x128xf32>
    %104 = tpu.matmul %101, %7, %cst_28 {dimension_numbers = #tpu.dot_dimension_numbers<[1], [0], [0], [1], [0, 0, 1, 1], [], []>} : vector<8x32xf32>, vector<32x128xf32>, vector<8x128xf32> -> vector<8x128xf32>
    %105 = arith.addf %103, %104 : vector<8x128xf32>
    %106 = math.tanh %105 : vector<8x128xf32>
    %107 = arith.mulf %16, %106 : vector<8x128xf32>
    %108 = arith.addf %107, %19 : vector<8x128xf32>
    %109 = vector.extract_strided_slice %108 {offsets = [0, 0], sizes = [8, 32], strides = [1, 1]} : vector<8x128xf32> to vector<8x32xf32>
    %110 = vector.extract_strided_slice %108 {offsets = [0, 32], sizes = [8, 32], strides = [1, 1]} : vector<8x128xf32> to vector<8x32xf32>
    %111 = vector.extract_strided_slice %108 {offsets = [0, 64], sizes = [8, 32], strides = [1, 1]} : vector<8x128xf32> to vector<8x32xf32>
    %112 = vector.extract_strided_slice %108 {offsets = [0, 96], sizes = [8, 32], strides = [1, 1]} : vector<8x128xf32> to vector<8x32xf32>
    %113 = arith.mulf %110, %99 : vector<8x32xf32>
    %114 = arith.mulf %109, %111 : vector<8x32xf32>
    %115 = arith.addf %113, %114 : vector<8x32xf32>
    %116 = math.tanh %115 : vector<8x32xf32>
    %117 = arith.mulf %112, %116 : vector<8x32xf32>
    %118 = arith.addf %102, %117 : vector<8x32xf32>
    %c6 = arith.constant 6 : index
    %c0_29 = arith.constant 0 : index
    %119 = tpu.strided_load %arg6[%c6, %c0_29] {strides = array<i32: 8, 1>} : memref<64x128xf32, #tpu.memory_space<vmem>>, vector<8x128xf32>
    %cst_30 = arith.constant dense<0.000000e+00> : vector<8x128xf32>
    %120 = tpu.matmul %117, %7, %cst_30 {dimension_numbers = #tpu.dot_dimension_numbers<[1], [0], [0], [1], [0, 0, 1, 1], [], []>} : vector<8x32xf32>, vector<32x128xf32>, vector<8x128xf32> -> vector<8x128xf32>
    %121 = arith.addf %119, %120 : vector<8x128xf32>
    %122 = math.tanh %121 : vector<8x128xf32>
    %123 = arith.mulf %16, %122 : vector<8x128xf32>
    %124 = arith.addf %123, %19 : vector<8x128xf32>
    %125 = vector.extract_strided_slice %124 {offsets = [0, 0], sizes = [8, 32], strides = [1, 1]} : vector<8x128xf32> to vector<8x32xf32>
    %126 = vector.extract_strided_slice %124 {offsets = [0, 32], sizes = [8, 32], strides = [1, 1]} : vector<8x128xf32> to vector<8x32xf32>
    %127 = vector.extract_strided_slice %124 {offsets = [0, 64], sizes = [8, 32], strides = [1, 1]} : vector<8x128xf32> to vector<8x32xf32>
    %128 = vector.extract_strided_slice %124 {offsets = [0, 96], sizes = [8, 32], strides = [1, 1]} : vector<8x128xf32> to vector<8x32xf32>
    %129 = arith.mulf %126, %115 : vector<8x32xf32>
    %130 = arith.mulf %125, %127 : vector<8x32xf32>
    %131 = arith.addf %129, %130 : vector<8x32xf32>
    %132 = math.tanh %131 : vector<8x32xf32>
    %133 = arith.mulf %128, %132 : vector<8x32xf32>
    %134 = arith.addf %118, %133 : vector<8x32xf32>
    %c7 = arith.constant 7 : index
    %c0_31 = arith.constant 0 : index
    %135 = tpu.strided_load %arg6[%c7, %c0_31] {strides = array<i32: 8, 1>} : memref<64x128xf32, #tpu.memory_space<vmem>>, vector<8x128xf32>
    %cst_32 = arith.constant dense<0.000000e+00> : vector<8x128xf32>
    %136 = tpu.matmul %133, %7, %cst_32 {dimension_numbers = #tpu.dot_dimension_numbers<[1], [0], [0], [1], [0, 0, 1, 1], [], []>} : vector<8x32xf32>, vector<32x128xf32>, vector<8x128xf32> -> vector<8x128xf32>
    %137 = arith.addf %135, %136 : vector<8x128xf32>
    %138 = math.tanh %137 : vector<8x128xf32>
    %139 = arith.mulf %16, %138 : vector<8x128xf32>
    %140 = arith.addf %139, %19 : vector<8x128xf32>
    %141 = vector.extract_strided_slice %140 {offsets = [0, 0], sizes = [8, 32], strides = [1, 1]} : vector<8x128xf32> to vector<8x32xf32>
    %142 = vector.extract_strided_slice %140 {offsets = [0, 32], sizes = [8, 32], strides = [1, 1]} : vector<8x128xf32> to vector<8x32xf32>
    %143 = vector.extract_strided_slice %140 {offsets = [0, 64], sizes = [8, 32], strides = [1, 1]} : vector<8x128xf32> to vector<8x32xf32>
    %144 = vector.extract_strided_slice %140 {offsets = [0, 96], sizes = [8, 32], strides = [1, 1]} : vector<8x128xf32> to vector<8x32xf32>
    %145 = arith.mulf %142, %131 : vector<8x32xf32>
    %146 = arith.mulf %141, %143 : vector<8x32xf32>
    %147 = arith.addf %145, %146 : vector<8x32xf32>
    %148 = math.tanh %147 : vector<8x32xf32>
    %149 = arith.mulf %144, %148 : vector<8x32xf32>
    %150 = arith.addf %134, %149 : vector<8x32xf32>
    %cst_33 = arith.constant 1.250000e-01 : f32
    %151 = vector.broadcast %cst_33 : f32 to vector<8x32xf32>
    %152 = arith.mulf %150, %151 : vector<8x32xf32>
    %c0_34 = arith.constant 0 : index
    %c0_35 = arith.constant 0 : index
    %153 = vector.load %arg5[%c0_34, %c0_35] : memref<8x32xf32, #tpu.memory_space<vmem>>, vector<8x32xf32>
    tpu.vector_store %arg5[%c0_34, %c0_35], %152 {strides = array<i32>} : memref<8x32xf32, #tpu.memory_space<vmem>>, vector<8x32xf32>,
    return
  }
  func.func @transform_0(%arg0: i32) -> (i32, i32) {
    %c0_i32 = arith.constant 0 : i32
    %c0_i32_0 = arith.constant 0 : i32
    %c0_i32_1 = arith.constant 0 : i32
    return %c0_i32, %c0_i32_0 : i32, i32
  }
  func.func @transform_1(%arg0: i32) -> (i32, i32) {
    %c0_i32 = arith.constant 0 : i32
    %c0_i32_0 = arith.constant 0 : i32
    %c0_i32_1 = arith.constant 0 : i32
    return %c0_i32, %c0_i32_0 : i32, i32
  }
  func.func @transform_2(%arg0: i32) -> (i32, i32) {
    %c0_i32 = arith.constant 0 : i32
    %c0_i32_0 = arith.constant 0 : i32
    %c0_i32_1 = arith.constant 0 : i32
    return %c0_i32, %c0_i32_0 : i32, i32
  }
  func.func @transform_3(%arg0: i32) -> (i32, i32) {
    %c0_i32 = arith.constant 0 : i32
    %c0_i32_0 = arith.constant 0 : i32
    %c0_i32_1 = arith.constant 0 : i32
    return %c0_i32, %c0_i32_0 : i32, i32
  }
  func.func @transform_4(%arg0: i32) -> (i32, i32) {
    %c0_i32 = arith.constant 0 : i32
    %c0_i32_0 = arith.constant 0 : i32
    %c0_i32_1 = arith.constant 0 : i32
    return %c0_i32, %c0_i32_0 : i32, i32
  }
}

</mosaic_0001>

<bundles_post_ra>
// kernel: lstm_speaker_encoder_forward.1
= control target key start
LH: loop header
LB: loop body
LE: loop exit
PB: predicated region body
PF: predicated region fallthrough
CT: control target
= control target key end

     0   :  { %9 = vsyncpa [#allocation4], 0  ;;  %s1649_s0 = inlined_call_operand.hbm [shape: f32[64,32], index: 0, kind: input, shape index: {}]   ;;  %s1650_s1 = inlined_call_operand.hbm [shape: f32[32,128], index: 1, kind: input, shape index: {}]   ;;  %s1651_s2 = inlined_call_operand.hbm [shape: f32[32,128], index: 2, kind: input, shape index: {}]   ;;  %s1652_s3 = inlined_call_operand.vmem [shape: f32[1,128], index: 3, kind: input, shape index: {}]   ;;  %s1653_s4 = inlined_call_operand.hbm [shape: f32[8,32], index: 4, kind: output, shape index: {}]  }
   0x1   :  { %10 = vsyncpa [#allocation7], 0 }
   0x2   :  { %11 = vsyncpa [#allocation5], 0  ;;  %s1424_s15 = smov [#allocation6]   ;;  %s1425_s17 = smov [#allocation3]  }
   0x3   :  { %s29_s16 = sshll.u32 %s1424_s15, 4  ;;  %s17_s18 = sshll.u32 %s1425_s17, 4  ;;  %s30_s16 = int_to_ptr.vmem [resolvable:$true] %s29_s16  ;;  %s1461_s18 = int_to_ptr.vmem [resolvable:$true] %s17_s18 }
   0x4   :  { %s1330_s21 = scalar_lea.hbm %s1650_s1, 512 }
   0x5   :  { %p1331_p0 = scmp.ne.s32.totalorder %s1650_s1, %s1330_s21  ;;  %p1334_p1 = scmp.lt.u32.totalorder %s1330_s21, %s1650_s1 }
   0x7   :  { %p1336_p2 = pnand %p1334_p1, %p1331_p0 }
   0x9   :  { %1339 = shalt.err (!%p1336_p2)
}
   0xa   :  { %s1340_s26 = scalar_lea.vmem %s30_s16, 512  ;;  %p1345_p4 = scmp.lt.s32.totalorder %s30_s16, %s30_s16 }
   0xb   :  { %p1341_p3 = scmp.ne.s32.totalorder %s30_s16, %s1340_s26  ;;  %p1346_p5 = scmp.lt.s32.totalorder %s1340_s26, %s1340_s26 }
   0xd   :  { %p1347_p6 = por %p1346_p5, %p1345_p4 }
   0xf   :  { %p1348_p7 = pnand %p1347_p6, %p1341_p3 }
  0x11   :  { %1351 = shalt.err (!%p1348_p7)
}
  0x12   :  { %s1426_s27 = smov 128   ;;  %s1427_s28 = smov 8  }
  0x13   :  { %35 = dma.hbm_to_vmem [thread:$0]  %s1650_s1, 512, %s30_s16, [#allocation7], %s1426_s27, %s1426_s27, %s1427_s28  }
  0x14   :  { %s1352_s7 = scalar_lea.hbm %s1649_s0, 1024 }
  0x15   :  { %p1353_p8 = scmp.ne.s32.totalorder %s1649_s0, %s1352_s7  ;;  %p1356_p9 = scmp.lt.u32.totalorder %s1352_s7, %s1649_s0 }
  0x17   :  { %p1358_p10 = pnand %p1356_p9, %p1353_p8 }
  0x19   :  { %1361 = shalt.err (!%p1358_p10)
}
  0x1a   :  { %s1362_s12 = scalar_lea.vmem %s1461_s18, 1024  ;;  %p1367_p12 = scmp.lt.s32.totalorder %s1461_s18, %s1461_s18 }
  0x1b   :  { %p1363_p11 = scmp.ne.s32.totalorder %s1461_s18, %s1362_s12  ;;  %p1368_p13 = scmp.lt.s32.totalorder %s1362_s12, %s1362_s12 }
  0x1d   :  { %p1369_p0 = por %p1368_p13, %p1367_p12 }
  0x1f   :  { %p1370_p1 = pnand %p1369_p0, %p1363_p11 }
  0x21   :  { %1373 = shalt.err (!%p1370_p1)
}
  0x22   :  { %23 = dma.hbm_to_vmem [thread:$0]  %s1649_s0, 1024, %s1461_s18, [#allocation4], %s1426_s27, %s1426_s27, %s1427_s28  }
  0x23   :  { %s1428_s14 = smov [#allocation8]   ;;  %s1374_s19 = scalar_lea.hbm %s1651_s2, 512 }
  0x24   :  { %s41_s15 = sshll.u32 %s1428_s14, 4  ;;  %p1375_p2 = scmp.ne.s32.totalorder %s1651_s2, %s1374_s19  ;;  %s42_s15 = int_to_ptr.vmem [resolvable:$true] %s41_s15 }
  0x25   :  { %p1378_p3 = scmp.lt.u32.totalorder %s1374_s19, %s1651_s2 }
  0x27   :  { %p1380_p4 = pnand %p1378_p3, %p1375_p2 }
  0x29   :  { %1383 = shalt.err (!%p1380_p4)
}
  0x2a   :  { %s1384_s24 = scalar_lea.vmem %s42_s15, 512  ;;  %p1389_p6 = scmp.lt.s32.totalorder %s42_s15, %s42_s15 }
  0x2b   :  { %p1385_p5 = scmp.ne.s32.totalorder %s42_s15, %s1384_s24  ;;  %p1390_p7 = scmp.lt.s32.totalorder %s1384_s24, %s1384_s24 }
  0x2d   :  { %p1391_p8 = por %p1390_p7, %p1389_p6 }
  0x2f   :  { %p1392_p9 = pnand %p1391_p8, %p1385_p5 }
  0x31   :  { %1395 = shalt.err (!%p1392_p9)
}
  0x32   :  { %47 = dma.hbm_to_vmem [thread:$0]  %s1651_s2, 512, %s42_s15, [#allocation7], %s1426_s27, %s1426_s27, %s1427_s28  }
  0x33   :  { %1418 = dma.done.wait [#allocation4], 1024  }
  0x34   :  { %1419 = vsyncadd [#allocation4], 4294966272 }
  0x35   :  { %1420 = dma.done.wait [#allocation7], 1024  }
  0x36   :  { %1421 = vsyncadd [#allocation7], 4294966272  ;;  %v1429_v0 = vmov 0.0|0.0   ;;  %vm1430_vm0 = vmmov 0   ;;  %v1431_v1 = vmov 0.0   ;;  %vm78_vm1 = vcmask 261120  }
  0x37   :  { %1238 = vmatprep.subr.bf16.mxu1 %v1429_v0  ;;  %1150 = vmatprep.mubr.msk.f32.mxu1 %vm1430_vm0, %v1431_v1  ;;  %v67_v2 = vld [vmem:[#allocation6] sm:$0xff]  ;;  %v68_v3 = vld [vmem:[#allocation6 + $0x8] sm:$0xff]  ;;  %v69_v4 = vld [vmem:[#allocation6 + $0x10] sm:$0xff]  ;;  %v220_v41 = vlaneseq  ;;  %v1432_v47 = vmov 0.5   ;;  %s1434_s26 = smov 32   ;;  %s1435_s27 = smov [#allocation9]  }
  0x38   :  { %v1230_v5 = vpack.c.bf16 %v68_v3, %v67_v2  ;;  %v70_v6 = vld [vmem:[#allocation6 + $0x18] sm:$0xff]  ;;  %v59_v7 = vld [vmem:[#allocation3] sm:$0xff]  ;;  %v217_v10 = vld [vmem:[#allocation8 + $0x8] sm:$0xff]  ;;  %s1044_s28 = sshll.u32 %s1435_s27, 4  ;;  %s1045_s28 = int_to_ptr.vmem [resolvable:$true] %s1044_s28 }
  0x39   :  { %v1234_v8 = vpack.c.bf16 %v70_v6, %v69_v4  ;;  %1130 = vmatprep.mubr.msk.f32.mxu0 %vm78_vm1, %v59_v7  ;;  %v216_v9 = vld [vmem:[#allocation8] sm:$0xff]  ;;  %v218_v11 = vld [vmem:[#allocation8 + $0x10] sm:$0xff]  ;;  %v219_v13 = vld [vmem:[#allocation8 + $0x18] sm:$0xff]  ;;  %v221_v46 = vand.u32 127, %v220_v41  ;;  %s1396_s29 = scalar_lea.vmem %s1045_s28, 128  ;;  %p1401_p11 = scmp.lt.s32.totalorder %s1045_s28, %s1045_s28 }
  0x3a   :  { %1231 = vmatprep.subr.bf16.mxu0 %v1230_v5  ;;  %v1517_v12 = vpack.c.bf16 %v217_v10, %v216_v9  ;;  %v1520_v14 = vpack.c.bf16 %v219_v13, %v218_v11  ;;  %v60_v15 = vld [vmem:[#allocation3 + $0x8] sm:$0xff]  ;;  %v61_v16 = vld [vmem:[#allocation3 + $0x10] sm:$0xff]  ;;  %v62_v17 = vld [vmem:[#allocation3 + $0x18] sm:$0xff]  ;;  %p1397_p10 = scmp.ne.s32.totalorder %s1045_s28, %s1396_s29  ;;  %p1402_p12 = scmp.lt.s32.totalorder %s1396_s29, %s1396_s29 }
  0x3b   :  { %1233 = vmatpush3.bf16.msra.mxu0 %v1230_v5  ;;  %v63_v18 = vld [vmem:[#allocation3 + $0x20] sm:$0xff]  ;;  %v64_v19 = vld [vmem:[#allocation3 + $0x28] sm:$0xff]  ;;  %v65_v20 = vld [vmem:[#allocation3 + $0x30] sm:$0xff]  ;;  %vm222_vm2 = vcmp.ge.s32.totalorder %v221_v46, 64  ;;  %vm223_vm3 = vcmp.lt.s32.totalorder %v221_v46, 96 }
  0x3c   :  { %1235 = vmatprep.subr.bf16.mxu0 %v1234_v8  ;;  %1240 = vmatpush3.bf16.msra.mxu1 %v1517_v12  ;;  %v66_v21 = vld [vmem:[#allocation3 + $0x38] sm:$0xff]  ;;  %v1054_v22 = vld [vmem:[%s1652_s3] ss:$0 sm:$0xff]  ;;  %vm224_vm4 = vmand %vm222_vm2, %vm223_vm3  ;;  %s1433_s3 = smov 64   ;;  %p1403_p13 = por %p1402_p12, %p1401_p11 }
  0x3d   :  { %1241 = vmatprep.subr.bf16.mxu1 %v1429_v0  ;;  %v1549_v48 = vsel %vm224_vm4, 1.0, %v1432_v47  ;;  %v1551_v50 = vsel %vm224_vm4, 0.0, %v1432_v47 }
  0x3e   :  { %p1404_p0 = pnand %p1403_p13, %p1397_p10 }
  0x3f   :  { %1237 = vmatpush3.bf16.msra.mxu0 %v1234_v8 }
  0x40   :  { %1250 = vmatprep.subr.bf16.mxu0 %v1429_v0  ;;  %1243 = vmatpush3.bf16.msra.mxu1 %v1520_v14 }
  0x41   :  { %1244 = vmatprep.subr.bf16.mxu1 %v1429_v0 }
  0x42   :  { %1131 = vmatmul.mubr.msk.f32.vlgmr.msra.gmra.mrb[0].mxu0 %vm78_vm1, %v60_v15 }
  0x43   :  { %1133 = vmatprep.mubr.msk.f32.mxu0 %vm78_vm1, %v61_v16  ;;  %1252 = vmatpush3.bf16.msra.mxu0 %v1517_v12 }
  0x44   :  { %1151 = vmatmul.mubr.f32.vlgmr.msra.gmra.mrb[0].mxu1 %v1431_v1  ;;  %1253 = vmatprep.subr.bf16.mxu0 %v1429_v0 }
  0x45   :  { %1246 = vmatpush3.bf16.msra.mxu1 %v1517_v12  ;;  %1161 = vmatprep.mubr.msk.f32.mxu1 %vm1430_vm0, %v1431_v1 }
  0x46   :  { %1134 = vmatmul.mubr.msk.f32.gmra.mrb[2].mxu0 %vm78_vm1, %v62_v17  ;;  %1247 = vmatprep.subr.bf16.mxu1 %v1429_v0 }
  0x47   :  { %1136 = vmatprep.mubr.msk.f32.mxu0 %vm78_vm1, %v63_v18  ;;  %1255 = vmatpush3.bf16.msra.mxu0 %v1520_v14 }
  0x48   :  { %1262 = vmatprep.subr.bf16.mxu0 %v1429_v0 }
  0x49   :  { %1249 = vmatpush3.bf16.msra.mxu1 %v1520_v14 }
  0x4a   :  { %1137 = vmatmul.mubr.msk.f32.gmra.mrb[4].mxu0 %vm78_vm1, %v64_v19  ;;  %1256 = vmatprep.subr.bf16.mxu1 %v1429_v0 }
  0x4b   :  { %1139 = vmatprep.mubr.msk.f32.mxu0 %vm78_vm1, %v65_v20 }
  0x4e   :  { %1140 = vmatmul.mubr.msk.f32.gmra.mrb[6].mxu0 %vm78_vm1, %v66_v21 }
  0x4f   :  { %1172 = vmatprep.mubr.msk.f32.mxu0 %vm1430_vm0, %v1431_v1 }
 0x115   :  { %v1132_v23 = vpop.f32.mrb[0].mxu0 }
 0x116   :  { %v175_v24 = vadd.f32 %v1132_v23, %v1054_v22  ;;  %v169_v25 = vpop.f32.mrb[1].mxu0 }
 0x117   :  { %v170_v26 = vadd.f32 %v1054_v22, %v169_v25  ;;  %v299_v27 = vpop.f32.mrb[0].mxu1 }
 0x118   :  { %209 = vst [vmem:[#allocation2 + $0x8] sm:$0xff] %v175_v24  ;;  %v1152_v29 = vpop.f32.mrb[1].mxu1 }
 0x119   :  { %208 = vst [vmem:[#allocation2] sm:$0xff] %v170_v26  ;;  %v1135_v28 = vpop.f32.mrb[2].mxu0 }
 0x11a   :  { %v185_v30 = vadd.f32 %v1135_v28, %v1054_v22  ;;  %v179_v31 = vpop.f32.mrb[3].mxu0 }
 0x11b   :  { %v180_v32 = vadd.f32 %v1054_v22, %v179_v31 }
 0x11c   :  { %211 = vst [vmem:[#allocation2 + $0x18] sm:$0xff] %v185_v30 }
 0x11d   :  { %210 = vst [vmem:[#allocation2 + $0x10] sm:$0xff] %v180_v32  ;;  %v1138_v33 = vpop.f32.mrb[4].mxu0 }
 0x11e   :  { %v195_v34 = vadd.f32 %v1138_v33, %v1054_v22  ;;  %v189_v35 = vpop.f32.mrb[5].mxu0 }
 0x11f   :  { %v190_v36 = vadd.f32 %v1054_v22, %v189_v35 }
 0x120   :  { %213 = vst [vmem:[#allocation2 + $0x28] sm:$0xff] %v195_v34 }
 0x121   :  { %212 = vst [vmem:[#allocation2 + $0x20] sm:$0xff] %v190_v36  ;;  %v1141_v37 = vpop.f32.mrb[6].mxu0 }
 0x122   :  { %v205_v38 = vadd.f32 %v1141_v37, %v1054_v22  ;;  %v199_v39 = vpop.f32.mrb[7].mxu0 }
 0x123   :  { %v200_v40 = vadd.f32 %v1054_v22, %v199_v39 }
 0x124   :  { %215 = vst [vmem:[#allocation2 + $0x38] sm:$0xff] %v205_v38  ;;  %v227_v42 = vld [vmem:[#allocation2] ss:$8 sm:$0xf] }
 0x125   :  { %214 = vst [vmem:[#allocation2 + $0x30] sm:$0xff] %v200_v40  ;;  %v326_v63 = vld [vmem:[#allocation2 + $0x1] ss:$8 sm:$0xf] }
 0x126   :  { %v427_v21 = vld [vmem:[#allocation2 + $0x2] ss:$8 sm:$0xf]  ;;  %v528_v41 = vld [vmem:[#allocation2 + $0x3] ss:$8 sm:$0xf] }
 0x12c   :  { %v228_v43 = vld [vmem:[#allocation2] ss:$8 sm:$0xf0]  ;;  %v327_v62 = vld [vmem:[#allocation2 + $0x1] ss:$8 sm:$0xf0] }
 0x12d   :  { %v229_v44 = vor.u32 %v228_v43, %v227_v42  ;;  %v328_v2 = vor.u32 %v327_v62, %v326_v63  ;;  %v428_v20 = vld [vmem:[#allocation2 + $0x2] ss:$8 sm:$0xf0]  ;;  %v529_v40 = vld [vmem:[#allocation2 + $0x3] ss:$8 sm:$0xf0] }
 0x12e   :  { %v429_v22 = vor.u32 %v428_v20, %v427_v21  ;;  %v530_v42 = vor.u32 %v529_v40, %v528_v41  ;;  %v629_v62 = vld [vmem:[#allocation2 + $0x4] ss:$8 sm:$0xf]  ;;  %v731_v20 = vld [vmem:[#allocation2 + $0x5] ss:$8 sm:$0xf0] }
 0x12f   :  { %v303_v45 = vadd.f32 %v299_v27, %v229_v44  ;;  %v730_v21 = vld [vmem:[#allocation2 + $0x5] ss:$8 sm:$0xf] }
 0x131   :  { %1298 = vtanh.f32 %v303_v45 }
 0x13b   :  { %v1299_v49 = vpop.eup %1298 }
 0x13c   :  { %v305_v51 = vmul.f32 %v1299_v49, %v1549_v48 }
 0x13e   :  { %v306_v52 = vadd.f32 %v305_v51, %v1551_v50 }
 0x140   :  { %309 = vrot.lane.b32.xlu0 %v306_v52, %s1433_s3  ;;  %v307_v55 = vmul.f32 0.0, %v306_v52 }
 0x1b2   :  { %v310_v53 = vpop.permute.xlu0 %309 }
 0x1b3   :  { %v312_v54 = vmul.f32 %v310_v53, %v306_v52 }
 0x1b5   :  { %314 = vrot.lane.b32.xlu0 %v312_v54, %s1434_s26 }
 0x227   :  { %v315_v56 = vpop.permute.xlu0 %314 }
 0x228   :  { %v317_v57 = vadd.f32 %v315_v56, %v307_v55 }
 0x22a   :  { %1300 = vtanh.f32 %v317_v57 }
 0x234   :  { %v1301_v58 = vpop.eup %1300 }
 0x235   :  { %320 = vrot.lane.b32.xlu1 %v1301_v58, %s1433_s3 }
 0x2a7   :  { %v321_v59 = vpop.permute.xlu1 %320 }
 0x2a8   :  { %v323_v60 = vmul.f32 %v321_v59, %v306_v52 }
 0x2aa   :  { %330 = vrot.lane.b32.xlu1 %v323_v60, %s1434_s26 }
 0x31c   :  { %v331_v61 = vpop.permute.xlu1 %330 }
 0x31d   :  { %1162 = vmatmul.mubr.msk.f32.vlgmr.msra.gmra.mrb[2].mxu1 %vm78_vm1, %v331_v61  ;;  %v630_v61 = vld [vmem:[#allocation2 + $0x4] ss:$8 sm:$0xf0] }
 0x31e   :  { %1258 = vmatpush3.bf16.msra.mxu1 %v1517_v12  ;;  %1183 = vmatprep.mubr.msk.f32.mxu1 %vm1430_vm0, %v1431_v1  ;;  %v631_v63 = vor.u32 %v630_v61, %v629_v62 }
 0x31f   :  { %1259 = vmatprep.subr.bf16.mxu1 %v1429_v0 }
 0x322   :  { %1261 = vmatpush3.bf16.msra.mxu1 %v1520_v14 }
 0x323   :  { %1268 = vmatprep.subr.bf16.mxu1 %v1429_v0 }
 0x3f0   :  { %v400_v3 = vpop.f32.mrb[2].mxu1 }
 0x3f1   :  { %v404_v4 = vadd.f32 %v400_v3, %v328_v2  ;;  %v1163_v5 = vpop.f32.mrb[3].mxu1 }
 0x3f3   :  { %1302 = vtanh.f32 %v404_v4 }
 0x3fd   :  { %v1303_v6 = vpop.eup %1302 }
 0x3fe   :  { %v406_v7 = vmul.f32 %v1303_v6, %v1549_v48 }
 0x400   :  { %v407_v8 = vadd.f32 %v406_v7, %v1551_v50 }
 0x402   :  { %410 = vrot.lane.b32.xlu0 %v407_v8, %s1433_s3  ;;  %v408_v11 = vmul.f32 %v407_v8, %v317_v57 }
 0x474   :  { %v411_v9 = vpop.permute.xlu0 %410 }
 0x475   :  { %v413_v10 = vmul.f32 %v411_v9, %v407_v8 }
 0x477   :  { %415 = vrot.lane.b32.xlu1 %v413_v10, %s1434_s26 }
 0x4e9   :  { %v416_v13 = vpop.permute.xlu1 %415 }
 0x4ea   :  { %v418_v15 = vadd.f32 %v416_v13, %v408_v11 }
 0x4ec   :  { %1304 = vtanh.f32 %v418_v15 }
 0x4f6   :  { %v1305_v16 = vpop.eup %1304 }
 0x4f7   :  { %421 = vrot.lane.b32.xlu0 %v1305_v16, %s1433_s3 }
 0x569   :  { %v422_v17 = vpop.permute.xlu0 %421 }
 0x56a   :  { %v424_v18 = vmul.f32 %v422_v17, %v407_v8 }
 0x56c   :  { %431 = vrot.lane.b32.xlu1 %v424_v18, %s1434_s26  ;;  %v425_v36 = vadd.f32 %v424_v18, %v323_v60 }
 0x5de   :  { %v432_v19 = vpop.permute.xlu1 %431 }
 0x5df   :  { %1173 = vmatmul.mubr.msk.f32.vlgmr.msra.gmra.mrb[8].mxu0 %vm78_vm1, %v432_v19 }
 0x5e0   :  { %1264 = vmatpush3.bf16.msra.mxu0 %v1517_v12  ;;  %1194 = vmatprep.mubr.msk.f32.mxu0 %vm1430_vm0, %v1431_v1 }
 0x5e1   :  { %1265 = vmatprep.subr.bf16.mxu0 %v1429_v0 }
 0x5e4   :  { %1267 = vmatpush3.bf16.msra.mxu0 %v1520_v14 }
 0x5e5   :  { %1274 = vmatprep.subr.bf16.mxu0 %v1429_v0 }
 0x6b2   :  { %v501_v23 = vpop.f32.mrb[8].mxu0 }
 0x6b3   :  { %v505_v24 = vadd.f32 %v501_v23, %v429_v22  ;;  %v1174_v25 = vpop.f32.mrb[9].mxu0  ;;  %v732_v22 = vor.u32 %v731_v20, %v730_v21 }
 0x6b5   :  { %1306 = vtanh.f32 %v505_v24 }
 0x6bf   :  { %v1307_v26 = vpop.eup %1306 }
 0x6c0   :  { %v507_v27 = vmul.f32 %v1307_v26, %v1549_v48 }
 0x6c2   :  { %v508_v28 = vadd.f32 %v507_v27, %v1551_v50 }
 0x6c4   :  { %511 = vrot.lane.b32.xlu0 %v508_v28, %s1433_s3  ;;  %v509_v31 = vmul.f32 %v508_v28, %v418_v15 }
 0x736   :  { %v512_v29 = vpop.permute.xlu0 %511 }
 0x737   :  { %v514_v30 = vmul.f32 %v512_v29, %v508_v28 }
 0x739   :  { %516 = vrot.lane.b32.xlu1 %v514_v30, %s1434_s26 }
 0x7ab   :  { %v517_v32 = vpop.permute.xlu1 %516 }
 0x7ac   :  { %v519_v33 = vadd.f32 %v517_v32, %v509_v31 }
 0x7ae   :  { %1308 = vtanh.f32 %v519_v33 }
 0x7b8   :  { %v1309_v34 = vpop.eup %1308 }
 0x7b9   :  { %522 = vrot.lane.b32.xlu0 %v1309_v34, %s1433_s3 }
 0x82b   :  { %v523_v35 = vpop.permute.xlu0 %522 }
 0x82c   :  { %v525_v37 = vmul.f32 %v523_v35, %v508_v28  ;;  %v832_v35 = vld [vmem:[#allocation2 + $0x6] ss:$8 sm:$0xf0] }
 0x82e   :  { %v526_v38 = vadd.f32 %v525_v37, %v425_v36  ;;  %532 = vrot.lane.b32.xlu1 %v525_v37, %s1434_s26  ;;  %v831_v36 = vld [vmem:[#allocation2 + $0x6] ss:$8 sm:$0xf] }
 0x82f   :  { %v833_v37 = vor.u32 %v832_v35, %v831_v36 }
 0x8a0   :  { %v533_v39 = vpop.permute.xlu1 %532 }
 0x8a1   :  { %1184 = vmatmul.mubr.msk.f32.vlgmr.msra.gmra.mrb[4].mxu1 %vm78_vm1, %v533_v39 }
 0x8a2   :  { %1270 = vmatpush3.bf16.msra.mxu1 %v1517_v12  ;;  %1205 = vmatprep.mubr.msk.f32.mxu1 %vm1430_vm0, %v1431_v1 }
 0x8a3   :  { %1271 = vmatprep.subr.bf16.mxu1 %v1429_v0 }
 0x8a6   :  { %1273 = vmatpush3.bf16.msra.mxu1 %v1520_v14 }
 0x8a7   :  { %1280 = vmatprep.subr.bf16.mxu1 %v1429_v0 }
 0x974   :  { %v602_v43 = vpop.f32.mrb[4].mxu1 }
 0x975   :  { %v606_v44 = vadd.f32 %v602_v43, %v530_v42  ;;  %v1185_v45 = vpop.f32.mrb[5].mxu1 }
 0x977   :  { %1310 = vtanh.f32 %v606_v44 }
 0x981   :  { %v1311_v46 = vpop.eup %1310 }
 0x982   :  { %v608_v47 = vmul.f32 %v1311_v46, %v1549_v48 }
 0x984   :  { %v609_v49 = vadd.f32 %v608_v47, %v1551_v50 }
 0x986   :  { %612 = vrot.lane.b32.xlu0 %v609_v49, %s1433_s3  ;;  %v610_v53 = vmul.f32 %v609_v49, %v519_v33 }
 0x9f8   :  { %v613_v51 = vpop.permute.xlu0 %612 }
 0x9f9   :  { %v615_v52 = vmul.f32 %v613_v51, %v609_v49 }
 0x9fb   :  { %617 = vrot.lane.b32.xlu1 %v615_v52, %s1434_s26 }
 0xa6d   :  { %v618_v54 = vpop.permute.xlu1 %617 }
 0xa6e   :  { %v620_v55 = vadd.f32 %v618_v54, %v610_v53 }
 0xa70   :  { %1312 = vtanh.f32 %v620_v55 }
 0xa7a   :  { %v1313_v56 = vpop.eup %1312 }
 0xa7b   :  { %623 = vrot.lane.b32.xlu0 %v1313_v56, %s1433_s3  ;;  %v933_v56 = vld [vmem:[#allocation2 + $0x7] ss:$8 sm:$0xf0] }
 0xaed   :  { %v624_v57 = vpop.permute.xlu0 %623 }
 0xaee   :  { %v626_v58 = vmul.f32 %v624_v57, %v609_v49  ;;  %v932_v57 = vld [vmem:[#allocation2 + $0x7] ss:$8 sm:$0xf] }
 0xaf0   :  { %v627_v59 = vadd.f32 %v626_v58, %v526_v38  ;;  %633 = vrot.lane.b32.xlu1 %v626_v58, %s1434_s26  ;;  %v934_v58 = vor.u32 %v933_v56, %v932_v57 }
 0xb62   :  { %v634_v60 = vpop.permute.xlu1 %633 }
 0xb63   :  { %1195 = vmatmul.mubr.msk.f32.vlgmr.msra.gmra.mrb[10].mxu0 %vm78_vm1, %v634_v60 }
 0xb64   :  { %1276 = vmatpush3.bf16.msra.mxu0 %v1517_v12  ;;  %1216 = vmatprep.mubr.msk.f32.mxu0 %vm1430_vm0, %v1431_v1 }
 0xb65   :  { %1277 = vmatprep.subr.bf16.mxu0 %v1429_v0 }
 0xb68   :  { %1279 = vmatpush3.bf16.msra.mxu0 %v1520_v14 }
 0xc36   :  { %v703_v2 = vpop.f32.mrb[10].mxu0 }
 0xc37   :  { %v707_v3 = vadd.f32 %v703_v2, %v631_v63  ;;  %v1196_v4 = vpop.f32.mrb[11].mxu0 }
 0xc39   :  { %1314 = vtanh.f32 %v707_v3 }
 0xc43   :  { %v1315_v5 = vpop.eup %1314 }
 0xc44   :  { %v709_v6 = vmul.f32 %v1315_v5, %v1549_v48 }
 0xc46   :  { %v710_v7 = vadd.f32 %v709_v6, %v1551_v50 }
 0xc48   :  { %713 = vrot.lane.b32.xlu0 %v710_v7, %s1433_s3  ;;  %v711_v10 = vmul.f32 %v710_v7, %v620_v55 }
 0xcba   :  { %v714_v8 = vpop.permute.xlu0 %713 }
 0xcbb   :  { %v716_v9 = vmul.f32 %v714_v8, %v710_v7 }
 0xcbd   :  { %718 = vrot.lane.b32.xlu1 %v716_v9, %s1434_s26 }
 0xd2f   :  { %v719_v11 = vpop.permute.xlu1 %718 }
 0xd30   :  { %v721_v13 = vadd.f32 %v719_v11, %v711_v10 }
 0xd32   :  { %1316 = vtanh.f32 %v721_v13 }
 0xd3c   :  { %v1317_v15 = vpop.eup %1316 }
 0xd3d   :  { %724 = vrot.lane.b32.xlu0 %v1317_v15, %s1433_s3 }
 0xdaf   :  { %v725_v16 = vpop.permute.xlu0 %724 }
 0xdb0   :  { %v727_v17 = vmul.f32 %v725_v16, %v710_v7 }
 0xdb2   :  { %v728_v18 = vadd.f32 %v727_v17, %v627_v59  ;;  %734 = vrot.lane.b32.xlu1 %v727_v17, %s1434_s26 }
 0xe24   :  { %v735_v19 = vpop.permute.xlu1 %734 }
 0xe25   :  { %1206 = vmatmul.mubr.msk.f32.vlgmr.msra.gmra.mrb[6].mxu1 %vm78_vm1, %v735_v19 }
 0xe26   :  { %1282 = vmatpush3.bf16.msra.mxu1 %v1517_v12  ;;  %1227 = vmatprep.mubr.msk.f32.mxu1 %vm1430_vm0, %v1431_v1 }
 0xe27   :  { %1283 = vmatprep.subr.bf16.mxu1 %v1429_v0 }
 0xe2a   :  { %1285 = vmatpush3.bf16.msra.mxu1 %v1520_v14 }
 0xef8   :  { %v804_v23 = vpop.f32.mrb[6].mxu1 }
 0xef9   :  { %v808_v24 = vadd.f32 %v804_v23, %v732_v22  ;;  %v1207_v25 = vpop.f32.mrb[7].mxu1 }
 0xefb   :  { %1318 = vtanh.f32 %v808_v24 }
 0xf05   :  { %v1319_v26 = vpop.eup %1318 }
 0xf06   :  { %v810_v27 = vmul.f32 %v1319_v26, %v1549_v48 }
 0xf08   :  { %v811_v28 = vadd.f32 %v810_v27, %v1551_v50 }
 0xf0a   :  { %814 = vrot.lane.b32.xlu0 %v811_v28, %s1433_s3  ;;  %v812_v0 = vmul.f32 %v811_v28, %v721_v13 }
 0xf7c   :  { %v815_v12 = vpop.permute.xlu0 %814 }
 0xf7d   :  { %v817_v1 = vmul.f32 %v815_v12, %v811_v28 }
 0xf7f   :  { %819 = vrot.lane.b32.xlu1 %v817_v1, %s1434_s26 }
 0xff1   :  { %v820_v14 = vpop.permute.xlu1 %819 }
 0xff2   :  { %v822_v29 = vadd.f32 %v820_v14, %v812_v0 }
 0xff4   :  { %1320 = vtanh.f32 %v822_v29 }
 0xffe   :  { %v1321_v30 = vpop.eup %1320 }
 0xfff   :  { %825 = vrot.lane.b32.xlu0 %v1321_v30, %s1433_s3 }
0x1071   :  { %v826_v31 = vpop.permute.xlu0 %825 }
0x1072   :  { %v828_v32 = vmul.f32 %v826_v31, %v811_v28 }
0x1074   :  { %v829_v33 = vadd.f32 %v828_v32, %v728_v18  ;;  %835 = vrot.lane.b32.xlu1 %v828_v32, %s1434_s26 }
0x10e6   :  { %v836_v34 = vpop.permute.xlu1 %835 }
0x10e7   :  { %1217 = vmatmul.mubr.msk.f32.vlgmr.msra.gmra.mrb[12].mxu0 %vm78_vm1, %v836_v34 }
0x11ba   :  { %v905_v38 = vpop.f32.mrb[12].mxu0 }
0x11bb   :  { %v909_v39 = vadd.f32 %v905_v38, %v833_v37  ;;  %v1218_v40 = vpop.f32.mrb[13].mxu0 }
0x11bd   :  { %1322 = vtanh.f32 %v909_v39 }
0x11c7   :  { %v1323_v41 = vpop.eup %1322 }
0x11c8   :  { %v911_v42 = vmul.f32 %v1323_v41, %v1549_v48 }
0x11ca   :  { %v912_v43 = vadd.f32 %v911_v42, %v1551_v50 }
0x11cc   :  { %915 = vrot.lane.b32.xlu0 %v912_v43, %s1433_s3  ;;  %v913_v46 = vmul.f32 %v912_v43, %v822_v29 }
0x123e   :  { %v916_v44 = vpop.permute.xlu0 %915 }
0x123f   :  { %v918_v45 = vmul.f32 %v916_v44, %v912_v43 }
0x1241   :  { %920 = vrot.lane.b32.xlu1 %v918_v45, %s1434_s26 }
0x12b3   :  { %v921_v47 = vpop.permute.xlu1 %920 }
0x12b4   :  { %v923_v49 = vadd.f32 %v921_v47, %v913_v46 }
0x12b6   :  { %1324 = vtanh.f32 %v923_v49 }
0x12c0   :  { %v1325_v51 = vpop.eup %1324 }
0x12c1   :  { %926 = vrot.lane.b32.xlu0 %v1325_v51, %s1433_s3 }
0x1333   :  { %v927_v52 = vpop.permute.xlu0 %926 }
0x1334   :  { %v929_v53 = vmul.f32 %v927_v52, %v912_v43 }
0x1336   :  { %v930_v54 = vadd.f32 %v929_v53, %v829_v33  ;;  %936 = vrot.lane.b32.xlu1 %v929_v53, %s1434_s26 }
0x13a8   :  { %v937_v55 = vpop.permute.xlu1 %936 }
0x13a9   :  { %1228 = vmatmul.mubr.msk.f32.vlgmr.msra.gmra.mrb[8].mxu1 %vm78_vm1, %v937_v55 }
0x147c   :  { %v1006_v59 = vpop.f32.mrb[8].mxu1 }
0x147d   :  { %v1010_v60 = vadd.f32 %v1006_v59, %v934_v58  ;;  %v1229_v61 = vpop.f32.mrb[9].mxu1 }
0x147f   :  { %1326 = vtanh.f32 %v1010_v60 }
0x1489   :  { %v1327_v62 = vpop.eup %1326 }
0x148a   :  { %v1012_v63 = vmul.f32 %v1327_v62, %v1549_v48 }
0x148c   :  { %v1013_v2 = vadd.f32 %v1012_v63, %v1551_v50 }
0x148e   :  { %1016 = vrot.lane.b32.xlu0 %v1013_v2, %s1433_s3  ;;  %v1014_v5 = vmul.f32 %v1013_v2, %v923_v49 }
0x1500   :  { %v1017_v3 = vpop.permute.xlu0 %1016 }
0x1501   :  { %v1019_v4 = vmul.f32 %v1017_v3, %v1013_v2 }
0x1503   :  { %1021 = vrot.lane.b32.xlu1 %v1019_v4, %s1434_s26 }
0x1575   :  { %v1022_v6 = vpop.permute.xlu1 %1021 }
0x1576   :  { %v1024_v7 = vadd.f32 %v1022_v6, %v1014_v5 }
0x1578   :  { %1328 = vtanh.f32 %v1024_v7 }
0x1582   :  { %v1329_v8 = vpop.eup %1328 }
0x1583   :  { %1027 = vrot.lane.b32.xlu0 %v1329_v8, %s1433_s3 }
0x15f5   :  { %v1028_v9 = vpop.permute.xlu0 %1027 }
0x15f6   :  { %v1030_v10 = vmul.f32 %v1028_v9, %v1013_v2 }
0x15f8   :  { %v1031_v11 = vadd.f32 %v1030_v10, %v930_v54 }
0x15fa   :  { %v1032_v13 = vmul.f32 0.125, %v1031_v11 }
0x15fc   :  { %1034 = vrot.lane.b32.xlu1 %v1032_v13, %s1434_s26 }
0x166e   :  { %v1035_v48 = vpop.permute.xlu1 %1034 }
0x166f   :  { %1037 = vst.msk [vmem:[#allocation9] sm:$0xff] %vm78_vm1, %v1035_v48 }
0x1670   :  { %1407 = shalt.err (!%p1404_p0)
}
0x1671   :  { %s1408_s6 = scalar_lea.hbm %s1653_s4, 128 }
0x1672   :  { %p1409_p1 = scmp.ne.s32.totalorder %s1653_s4, %s1408_s6  ;;  %p1412_p2 = scmp.lt.u32.totalorder %s1408_s6, %s1653_s4 }
0x1674   :  { %p1414_p3 = pnand %p1412_p2, %p1409_p1 }
0x1676   :  { %1417 = shalt.err (!%p1414_p3)
}
0x1677   :  { %1047 = dma.vmem_to_hbm [thread:$0]  %s1045_s28, 128, %s1653_s4, [#allocation5]  }
0x1678   :  { %1422 = dma.done.wait [#allocation5], 128  }
0x1679   :  { %1423 = vsyncadd [#allocation5], 4294967168 }
0x167a   :  { %1051 = vsyncpa [#allocation4], 1 }
0x167b   :  { %1052 = vsyncpa [#allocation7], 1 }
0x167c   :  { %1053 = vsyncpa [#allocation5], 1 }

</bundles_post_ra>
